<compile_context>
chip_gen: v5e
topology: v5e:2x2
jax: 0.10.0
libtpu: 0.0.40
codegen_flags: <defaults>
</compile_context>

<pallas_src>
import functools

import jax
import jax.numpy as jnp
from jax.experimental import pallas as pl
from jax.experimental.pallas import tpu as pltpu


def _round_up(n, m):
    return ((n + m - 1) // m) * m


def _vmem_capacity_bytes():
    try:
        return int(pltpu.get_tpu_info().vmem_capacity_bytes)
    except Exception:  # pragma: no cover - conservative fallback (v7x size)
        return 64 * 1024 * 1024


def _pick_tile_xy(xy, zpc, hp, op, in_itemsize, out_itemsize, budget_bytes, cap=1024):
    """Largest row-tile whose pipelined VMEM footprint stays under budget."""
    if xy <= 16:
        return xy
    per_row = (
        2 * zpc * in_itemsize        # input block, double buffered
        + 2 * op * out_itemsize      # output block, double buffered
        + 4 * (hp + op)              # f32 intermediates (h, out)
    )
    fixed = (
        2 * (zpc * hp + hp * op) * in_itemsize   # weights, double buffered
        + 2 * (hp + op) * 4                      # biases (f32), double buffered
    )
    avail = max(budget_bytes - fixed, 16 * per_row)
    tile = min(xy, cap, avail // per_row)
    if tile >= xy:
        return xy
    # multiple of 16 rows: sublane-aligned for bf16 input and f32 output blocks
    return max(16, (tile // 16) * 16)


def _bev_pooler_kernel(x_ref, w1_ref, b1_ref, w2_ref, b2_ref, o_ref):
    # x_ref block: (1, TILE_XY, Zp*C) bf16 -- already max-pooled in the wrapper.
    x = x_ref[0]

    # Conv2d #1 (1x1) as one big-K MXU matmul: (TILE_XY, Zp*C) @ (Zp*C, Hp)
    h = jnp.dot(x, w1_ref[...], preferred_element_type=jnp.float32)
    h = jnp.maximum(h + b1_ref[...], 0.0)  # bias (f32) + ReLU

    # Conv2d #2 (1x1): (TILE_XY, Hp) @ (Hp, Op), bf16 operands, f32 accumulate
    out = jnp.dot(h.astype(w2_ref.dtype), w2_ref[...],
                  preferred_element_type=jnp.float32) + b2_ref[...]
    o_ref[0] = out.astype(o_ref.dtype)


def bev_pooler_forward(x_ncdhw, w1, b1, w2, b2, *, split_z, grid_z):
    """x_ncdhw: [B, C, X, Y, Z] float32 (PyTorch layout). Returns [B, C, X, Y] f32."""
    B, C, X, Y, Z = x_ncdhw.shape
    assert Z == grid_z and grid_z % split_z == 0
    pool_k = grid_z // split_z
    Zp = Z // pool_k
    H = w1.shape[0]          # hidden = embed_dims
    O = w2.shape[0]          # out    = embed_dims
    XY = X * Y
    ZpC = Zp * C
    assert w1.shape == (H, ZpC) and w2.shape == (O, H)

    Hp = _round_up(H, 128)   # lane-dense hidden dim (zero padding is exact)
    Op = _round_up(O, 128)   # lane-dense output dim (sliced off below)

    compute_dtype = jnp.bfloat16
    out_dtype = x_ncdhw.dtype
    in_itemsize = jnp.dtype(compute_dtype).itemsize
    out_itemsize = jnp.dtype(out_dtype).itemsize

    # ---- VMEM budget / tiling (generation-aware) ----
    vmem_cap = _vmem_capacity_bytes()
    budget = int(0.6 * vmem_cap)                 # leave headroom for Mosaic internals
    TILE_XY = _pick_tile_xy(XY, ZpC, Hp, Op, in_itemsize, out_itemsize, budget)
    XYp = _round_up(XY, TILE_XY)
    n_xy_tiles = XYp // TILE_XY

    per_row = 2 * ZpC * in_itemsize + 2 * Op * out_itemsize + 4 * (Hp + Op)
    fixed = 2 * (ZpC * Hp + Hp * Op) * in_itemsize + 2 * (Hp + Op) * 4
    footprint = fixed + per_row * TILE_XY + (4 << 20)
    vmem_limit = int(min(vmem_cap, max(32 << 20, 2 * footprint)))

    # ---- wrapper glue (plain XLA) ----
    # 1) Max-pool over the contiguous Z axis FIRST (shrinks everything by pool_k).
    pooled = jnp.max(x_ncdhw.reshape(B, C, X, Y, Zp, pool_k), axis=-1)   # [B,C,X,Y,Zp]
    # 2) Repack to lane-dense [B, XY, Zp*C] with channel index = zp*C + c
    #    (matches PyTorch's permute(0,4,1,2,3).flatten(1,2) ordering), cast to bf16.
    x_k = (
        pooled.astype(compute_dtype)
        .transpose(0, 2, 3, 4, 1)                # (B, X, Y, Zp, C)
        .reshape(B, XY, ZpC)
    )
    if XYp != XY:
        x_k = jnp.pad(x_k, ((0, 0), (0, XYp - XY), (0, 0)))

    # Conv weights as lane-dense matmul operands (bf16), biases in f32.
    w1_k = jnp.zeros((ZpC, Hp), compute_dtype).at[:, :H].set(w1.T.astype(compute_dtype))
    b1_k = jnp.zeros((1, Hp), jnp.float32).at[:, :H].set(b1.reshape(1, H).astype(jnp.float32))
    w2_k = jnp.zeros((Hp, Op), compute_dtype).at[:H, :O].set(w2.T.astype(compute_dtype))
    b2_k = jnp.zeros((1, Op), jnp.float32).at[:, :O].set(b2.reshape(1, O).astype(jnp.float32))

    out = pl.pallas_call(
        _bev_pooler_kernel,
        out_shape=jax.ShapeDtypeStruct((B, XYp, Op), out_dtype),
        grid_spec=pltpu.PrefetchScalarGridSpec(
            num_scalar_prefetch=0,
            grid=(B, n_xy_tiles),
            in_specs=[
                pl.BlockSpec((1, TILE_XY, ZpC), lambda b, t: (b, t, 0)),
                pl.BlockSpec((ZpC, Hp), lambda b, t: (0, 0)),
                pl.BlockSpec((1, Hp), lambda b, t: (0, 0)),
                pl.BlockSpec((Hp, Op), lambda b, t: (0, 0)),
                pl.BlockSpec((1, Op), lambda b, t: (0, 0)),
            ],
            out_specs=pl.BlockSpec((1, TILE_XY, Op), lambda b, t: (b, t, 0)),
        ),
        compiler_params=pltpu.CompilerParams(
            dimension_semantics=("parallel", "parallel"),
            vmem_limit_bytes=vmem_limit,
        ),
    )(x_k, w1_k, b1_k, w2_k, b2_k)

    # Drop row/channel padding; back to PyTorch NCHW: [B, O, X, Y]
    out = out[:, :XY, :O].reshape(B, X, Y, O)
    return jnp.transpose(out, (0, 3, 1, 2))


def _reference(x_ncdhw, w1, b1, w2, b2, *, split_z, grid_z):
    """Pure-JAX f32 reference matching the PyTorch forward exactly."""
    B, C, X, Y, Z = x_ncdhw.shape
    pool_k = grid_z // split_z
    Zp = Z // pool_k
    pooled = jnp.max(x_ncdhw.reshape(B, C, X, Y, Zp, pool_k), axis=-1)   # [B,C,X,Y,Zp]
    feat = jnp.transpose(pooled, (0, 4, 1, 2, 3)).reshape(B, Zp * C, X, Y)
    h = jnp.einsum("bixy,oi->boxy", feat, w1) + b1[None, :, None, None]
    h = jnp.maximum(h, 0.0)
    out = jnp.einsum("bixy,oi->boxy", h, w2) + b2[None, :, None, None]
    return out


if __name__ == "__main__":
    # Small shapes consistent with the module structure:
    embed_dims = 16
    split = [4, 4, 4]
    grid_size = [8, 8, 8]
    B = 2
    C = embed_dims
    X, Y, Z = grid_size
    in_ch = embed_dims * split[2]   # Zp * C = 64
    out_ch = embed_dims             # 16

    key = jax.random.PRNGKey(0)
    kx, kw1, kb1, kw2, kb2 = jax.random.split(key, 5)
    x = jax.random.normal(kx, (B, C, X, Y, Z), dtype=jnp.float32)
    w1 = jax.random.normal(kw1, (out_ch, in_ch), dtype=jnp.float32) * 0.05
    b1 = jax.random.normal(kb1, (out_ch,), dtype=jnp.float32) * 0.05
    w2 = jax.random.normal(kw2, (out_ch, out_ch), dtype=jnp.float32) * 0.05
    b2 = jax.random.normal(kb2, (out_ch,), dtype=jnp.float32) * 0.05

    y = bev_pooler_forward(x, w1, b1, w2, b2, split_z=split[2], grid_z=grid_size[2])
    y = jax.block_until_ready(y)

    y_ref = _reference(x, w1, b1, w2, b2, split_z=split[2], grid_z=grid_size[2])
    assert y.shape == (B, out_ch, X, Y), y.shape
    # bf16 streaming on the kernel path -> bf16-level tolerance vs the f32 reference.
    assert jnp.allclose(y, y_ref, atol=5e-2, rtol=5e-2), "mismatch vs reference"
    print("KERNEL_OK")
</pallas_src>

<mosaic_0001>
module attributes {stable_mosaic.version = 11 : i64} {
  func.func @_bev_pooler_kernel(%arg0: i32, %arg1: i32, %arg2: memref<1x64x64xbf16, #tpu.memory_space<vmem>>, %arg3: memref<64x128xbf16, #tpu.memory_space<vmem>>, %arg4: memref<1x128xf32, #tpu.memory_space<vmem>>, %arg5: memref<128x128xbf16, #tpu.memory_space<vmem>>, %arg6: memref<1x128xf32, #tpu.memory_space<vmem>>, %arg7: memref<1x64x128xf32, #tpu.memory_space<vmem>>) attributes {dimension_semantics = [#tpu.dimension_semantics<parallel>, #tpu.dimension_semantics<parallel>], iteration_bounds = array<i64: 2, 1>, scalar_prefetch = 0 : i64, scratch_operands = 0 : i64, tpu.core_type = #tpu.core_type<tc>, window_params = [{transform_indices = @transform_0, window_bounds = array<i64: 1, 64, 64>}, {pipeline_mode = #tpu.pipeline_mode<synchronous>, transform_indices = @transform_1, window_bounds = array<i64: 64, 128>}, {pipeline_mode = #tpu.pipeline_mode<synchronous>, transform_indices = @transform_2, window_bounds = array<i64: 1, 128>}, {pipeline_mode = #tpu.pipeline_mode<synchronous>, transform_indices = @transform_3, window_bounds = array<i64: 128, 128>}, {pipeline_mode = #tpu.pipeline_mode<synchronous>, transform_indices = @transform_4, window_bounds = array<i64: 1, 128>}, {transform_indices = @transform_5, window_bounds = array<i64: 1, 64, 128>}]} {
    %c0 = arith.constant 0 : index
    %c0_0 = arith.constant 0 : index
    %c0_1 = arith.constant 0 : index
    %0 = vector.load %arg2[%c0, %c0_0, %c0_1] : memref<1x64x64xbf16, #tpu.memory_space<vmem>>, vector<1x64x64xbf16>
    %1 = vector.shape_cast %0 : vector<1x64x64xbf16> to vector<64x64xbf16>
    %c0_2 = arith.constant 0 : index
    %c0_3 = arith.constant 0 : index
    %2 = vector.load %arg3[%c0_2, %c0_3] : memref<64x128xbf16, #tpu.memory_space<vmem>>, vector<64x128xbf16>
    %cst = arith.constant dense<0.000000e+00> : vector<64x128xf32>
    %3 = tpu.matmul %1, %2, %cst {dimension_numbers = #tpu.dot_dimension_numbers<[1], [0], [0], [1], [0, 0, 1, 1], [], []>} : vector<64x64xbf16>, vector<64x128xbf16>, vector<64x128xf32> -> vector<64x128xf32>
    %c0_4 = arith.constant 0 : index
    %c0_5 = arith.constant 0 : index
    %4 = vector.load %arg4[%c0_4, %c0_5] : memref<1x128xf32, #tpu.memory_space<vmem>>, vector<1x128xf32>
    %5 = vector.broadcast %4 : vector<1x128xf32> to vector<64x128xf32>
    %6 = arith.addf %3, %5 : vector<64x128xf32>
    %cst_6 = arith.constant 0.000000e+00 : f32
    %7 = vector.broadcast %cst_6 : f32 to vector<64x128xf32>
    %8 = arith.maximumf %6, %7 : vector<64x128xf32>
    %9 = arith.truncf %8 : vector<64x128xf32> to vector<64x128xbf16>
    %c0_7 = arith.constant 0 : index
    %c0_8 = arith.constant 0 : index
    %10 = vector.load %arg5[%c0_7, %c0_8] : memref<128x128xbf16, #tpu.memory_space<vmem>>, vector<128x128xbf16>
    %cst_9 = arith.constant dense<0.000000e+00> : vector<64x128xf32>
    %11 = tpu.matmul %9, %10, %cst_9 {dimension_numbers = #tpu.dot_dimension_numbers<[1], [0], [0], [1], [0, 0, 1, 1], [], []>} : vector<64x128xbf16>, vector<128x128xbf16>, vector<64x128xf32> -> vector<64x128xf32>
    %c0_10 = arith.constant 0 : index
    %c0_11 = arith.constant 0 : index
    %12 = vector.load %arg6[%c0_10, %c0_11] : memref<1x128xf32, #tpu.memory_space<vmem>>, vector<1x128xf32>
    %13 = vector.broadcast %12 : vector<1x128xf32> to vector<64x128xf32>
    %14 = arith.addf %11, %13 : vector<64x128xf32>
    %c0_12 = arith.constant 0 : index
    %c0_13 = arith.constant 0 : index
    %c0_14 = arith.constant 0 : index
    %15 = vector.load %arg7[%c0_12, %c0_13, %c0_14] : memref<1x64x128xf32, #tpu.memory_space<vmem>>, vector<1x64x128xf32>
    %16 = vector.shape_cast %15 : vector<1x64x128xf32> to vector<64x128xf32>
    %17 = vector.shape_cast %14 : vector<64x128xf32> to vector<1x64x128xf32>
    tpu.vector_store %arg7[%c0_12, %c0_13, %c0_14], %17 {strides = array<i32>} : memref<1x64x128xf32, #tpu.memory_space<vmem>>, vector<1x64x128xf32>,
    return
  }
  func.func @transform_0(%arg0: i32, %arg1: i32) -> (i32, i32, i32) {
    %c0_i32 = arith.constant 0 : i32
    %c0_i32_0 = arith.constant 0 : i32
    return %arg0, %arg1, %c0_i32 : i32, i32, i32
  }
  func.func @transform_1(%arg0: i32, %arg1: i32) -> (i32, i32) {
    %c0_i32 = arith.constant 0 : i32
    %c0_i32_0 = arith.constant 0 : i32
    %c0_i32_1 = arith.constant 0 : i32
    return %c0_i32, %c0_i32_0 : i32, i32
  }
  func.func @transform_2(%arg0: i32, %arg1: i32) -> (i32, i32) {
    %c0_i32 = arith.constant 0 : i32
    %c0_i32_0 = arith.constant 0 : i32
    %c0_i32_1 = arith.constant 0 : i32
    return %c0_i32, %c0_i32_0 : i32, i32
  }
  func.func @transform_3(%arg0: i32, %arg1: i32) -> (i32, i32) {
    %c0_i32 = arith.constant 0 : i32
    %c0_i32_0 = arith.constant 0 : i32
    %c0_i32_1 = arith.constant 0 : i32
    return %c0_i32, %c0_i32_0 : i32, i32
  }
  func.func @transform_4(%arg0: i32, %arg1: i32) -> (i32, i32) {
    %c0_i32 = arith.constant 0 : i32
    %c0_i32_0 = arith.constant 0 : i32
    %c0_i32_1 = arith.constant 0 : i32
    return %c0_i32, %c0_i32_0 : i32, i32
  }
  func.func @transform_5(%arg0: i32, %arg1: i32) -> (i32, i32, i32) {
    %c0_i32 = arith.constant 0 : i32
    %c0_i32_0 = arith.constant 0 : i32
    return %arg0, %arg1, %c0_i32 : i32, i32, i32
  }
}

</mosaic_0001>

<bundles_post_ra>
// kernel: tpu_custom_call.1
= control target key start
LH: loop header
LB: loop body
LE: loop exit
PB: predicated region body
PF: predicated region fallthrough
CT: control target
= control target key end

     0   :  { %s1238_s0 = inlined_call_operand.hbm [shape: bf16[2,64,64], index: 0, kind: input, shape index: {}]   ;;  %s1239_s1 = inlined_call_operand.hbm [shape: bf16[64,128], index: 1, kind: input, shape index: {}]   ;;  %s1240_s2 = inlined_call_operand.vmem [shape: f32[1,128], index: 2, kind: input, shape index: {}]   ;;  %s1241_s3 = inlined_call_operand.hbm [shape: bf16[128,128], index: 3, kind: input, shape index: {}]   ;;  %s1242_s4 = inlined_call_operand.vmem [shape: f32[1,128], index: 4, kind: input, shape index: {}]   ;;  %s1243_s5 = inlined_call_operand.hbm [shape: f32[2,64,128], index: 5, kind: output, shape index: {}]  }
   0x1   :  { %1246 = sst [smem:[#allocation12_spill]] %s1239_s1 }
   0x2   :  { %1247 = sst [smem:[#allocation13_spill]] %s1241_s3 }
   0x3   :  { %10 = vsyncpa [#allocation3], 0 }
   0x4   :  { %12 = vsyncpa [#allocation3 + $0x1], 0 }
   0x5   :  { %13 = vsyncpa [#allocation6], 0 }
   0x6   :  { %14 = vsyncpa [#allocation4], 0 }
   0x7   :  { %16 = vsyncpa [#allocation4 + $0x1], 0  ;;  %s1066_s18 = smov 0   ;;  %s1068_s19 = smov 0  }
   0x8   :  { %s1070_s20 = smov 0   ;;  %s1072_s21 = smov 0  }
   0x9   :  { %s1074_s22 = smov 0   ;;  %s1076_s23 = smov 0  }
   0xa LB: > { %s646_s24 = sadd.s32 4294967295, %s1028_s23   ;;  %s647_s25 = sadd.s32 4294967294, %s1028_s23   ;;  %s1028_s23 = sphi %s1076_s23, %s22_s23   ;;  %s1024_s22 = sphi %s1074_s22, %s1261_s22   ;;  %s1020_s21 = sphi %s1072_s21, %s1260_s21   ;;  %s1016_s20 = sphi %s1070_s20, %s1259_s20   ;;  %s1012_s19 = sphi %s1068_s19, %s1258_s19   ;;  %s1008_s18 = sphi %s1066_s18, %s1257_s18  }
   0xb   : > { %p56_p0 = scmp.ne.s32.totalorder %s1012_s19, %s1008_s18  ;;  %p1102_p1 = scmp.eq.s32.totalorder %s646_s24, 0 }
   0xc   : > { %p172_p2 = scmp.eq.s32.totalorder %s647_s25, 1  ;;  %p648_p4 = scmp.ge.s32.totalorder %s1028_s23, 1 }
   0xd   : > { %p1108_p3 = por %p1102_p1, %p56_p0  ;;  %p179_p6 = scmp.lt.s32.totalorder %s1028_s23, 3 }
   0xe   : > { %p1113_p5 = por %p172_p2, %p56_p0  ;;  %s1251_s1 = sld [smem:[#allocation12_spill]] }
   0xf   : > { %p1121_p7 = pnand %p648_p4, %p179_p6  ;;  %s1030_s8 = smov [#allocation5]  }
  0x10   : > { %s192_s9 = sshll.u32 %s1030_s8, 4  ;;  %p651_p10 = scmp.ge.s32.totalorder %s1028_s23, 2  ;;  %s193_s9 = int_to_ptr.vmem [resolvable:$true] %s192_s9 }
  0x11   : > { %p775_p8 = pneg %p1121_p7  ;;  %s1253_s3 = sld [smem:[#allocation13_spill]] }
  0x12   : > { %s1244_s13 = smov 64   ;;  %s1245_s14 = smov 4  }
  0x13   : > { %p776_p9 = pnand %p775_p8, %p1102_p1  ;;  %s1033_s15 = smov [#allocation7]  }
  0x14   : > { %s190_s6 = sshll.u32 %s1251_s1, 4  ;;  %s209_s16 = sshll.u32 %s1033_s15, 4  ;;  %s191_s6 = int_to_ptr.hbm [resolvable:$true] %s190_s6  ;;  %s210_s16 = int_to_ptr.vmem [resolvable:$true] %s209_s16 }
  0x15   : > { %778 = dma.hbm_to_vmem [thread:$0]  (!%p776_p9), %s191_s6, 512, %s193_s9, [#allocation6], %s1244_s13, %s1244_s13, %s1245_s14  }
  0x16   : > { %p166_p11 = scmp.eq.s32.totalorder %s646_s24, 1  ;;  %s34_s17 = sadd.s32 1, %s1024_s22 }
  0x17   : > { %s207_s12 = sshll.u32 %s1253_s3, 4  ;;  %p36_p12 = scmp.ge.s32.totalorder %s34_s17, 2  ;;  %s208_s12 = int_to_ptr.hbm [resolvable:$true] %s207_s12 }
  0x18   : > { %781 = dma.hbm_to_vmem [thread:$0]  (!%p776_p9), %s208_s12, 1024, %s210_s16, [#allocation6], %s1244_s13, %s1244_s13, %s1245_s14  }
  0x19   : > { %s43_s25 = sadd.s32 1, %s1016_s20  ;;  %p50_p13 = scmp.ne.s32.totalorder %s1016_s20, %s1012_s19 }
  0x1a   : > { %p51_p0 = scmp.eq.s32.totalorder %s1028_s23, 0  ;;  %s1263_s17 = smov (%p36_p12, %s34_s17), 0 }
  0x1b   : > { %p1148_p2 = por %p166_p11, %p50_p13  ;;  %p792_p4 = scmp.lt.s32.totalorder %s1028_s23, 2 }
  0x1c   : > { %s38_s30 = ssub.s32 %s1024_s22, %s1263_s17  ;;  %s226_s6 = sand.u32 1, %s1016_s20  }
  0x1d   : > { %p41_p6 = scmp.eq.s32.totalorder %s38_s30, 0  ;;  %p52_p8 = por %p51_p0, %p50_p13 }
  0x1e   : > { %s652_s8 = sshll.u32 %s226_s6, 5  ;;  %s733_s24 = sshll.u32 %s1024_s22, 5 }
  0x1f   : > { %s1158_s9 = scalar_select %p41_p6, %s1016_s20, %s43_s25  }
  0x20   : > { %s237_s12 = scalar_lea.hbm %s1238_s0, %s733_s24  ;;  %s230_s16 = scalar_lea.vmem [#allocation2], %s652_s8 }
  0x21   : > { %s238_s15 = sshll.u32 %s237_s12, 4  ;;  %s240_s13 = sshll.u32 %s230_s16, 4  ;;  %s239_s15 = int_to_ptr.hbm [resolvable:$true] %s238_s15  ;;  %s241_s13 = int_to_ptr.vmem [resolvable:$true] %s240_s13 }
  0x22   : > { %p783_p9 = pnand %p792_p4, %p52_p8  ;;  %s227_s14 = scalar_lea.sflag [#allocation3], %s226_s6 }
  0x23   : > { %s1255_s1 = smov 4   ;;  %s1256_s3 = smov 64  }
  0x24   : > { %785 = dma.hbm_to_vmem [thread:$0]  (!%p783_p9), %s239_s15, 512, %s241_s13, %s227_s14, %s1256_s3, %s1256_s3, %s1255_s1  }
  0x25   : > { %252 = sbr.rel (%p1121_p7) target bundleno = 385 (0x181), region = 40  ;;  %s1171_s25 = sand.u32 (!%p1121_p7), 1, %s1012_s19  }
  0x26   : > { %s656_s30 = sshll.u32 (!%p1121_p7), %s1171_s25, 5  ;;  %s255_s8 = scalar_lea.sflag (!%p1121_p7), [#allocation3], %s1171_s25 }
  0x27   : > { %s1175_s24 = scalar_lea.vmem (!%p1121_p7), [#allocation2], %s656_s30 }
  0x2a   : > { %995 = dma.done.wait (%p1108_p3), %s255_s8, 512  }
  0x2b   : > { %997 = vsyncadd (%p1108_p3), %s255_s8, 4294966784 }
  0x2c   : > { %999 = dma.done.wait (%p1102_p1), [#allocation6], 1536  }
  0x2d   : > { %1001 = vsyncadd (%p1102_p1), [#allocation6], 4294965760  ;;  %v741_v0 = vld [vmem:[#allocation5 + $0x18] sm:$0xff]  ;;  %v740_v1 = vld [vmem:[#allocation5 + $0x10] sm:$0xff]  ;;  %vm363_vm0 = vcmask 523264   ;;  %s659_s26 = sshll.u32 %s1171_s25, 6 }
  0x2e   : > { %380 = vmatpush.bf16.msra.mxu0 %v741_v0  ;;  %751 = vmatpush.bf16.msra.mxu3 %v741_v0  ;;  %v739_v2 = vld [vmem:[#allocation5 + $0x8] sm:$0xff]  ;;  %v738_v3 = vld [vmem:[#allocation5] sm:$0xff]  ;;  %v749_v6 = vld [vmem:[#allocation7 + $0x38] sm:$0xff]  ;;  %s295_s13 = scalar_lea.vmem [#allocation8], %s659_s26  ;;  %s750_s14 = sshll.u32 %s1020_s21, 6 }
  0x2f   : > { %v734_v4 = vld [vmem:[%s1175_s24] sm:$0xff]  ;;  %v735_v5 = vld [vmem:[%s1175_s24 + $0x8] sm:$0xff]  ;;  %485 = vmatpush.bf16.msra.mxu1 %v749_v6  ;;  %v748_v7 = vld [vmem:[#allocation7 + $0x30] sm:$0xff]  ;;  %755 = vmatpush.bf16.msra.mxu2 %v749_v6  ;;  %s536_s11 = scalar_lea.hbm %s1243_s5, %s750_s14  ;;  %s537_s12 = sshll.u32 %s295_s13, 4  ;;  %s538_s12 = int_to_ptr.vmem [resolvable:$true] %s537_s12 }
  0x30   : > { %v747_v8 = vld [vmem:[#allocation7 + $0x28] sm:$0xff]  ;;  %v746_v9 = vld [vmem:[#allocation7 + $0x20] sm:$0xff]  ;;  %v736_v10 = vld [vmem:[%s1175_s24 + $0x10] sm:$0xff]  ;;  %s539_s15 = sshll.u32 %s536_s11, 4  ;;  %s523_s16 = scalar_lea.sflag [#allocation4], %s1171_s25  ;;  %s540_s15 = int_to_ptr.hbm [resolvable:$true] %s539_s15 }
  0x31   : > { %v737_v11 = vld [vmem:[%s1175_s24 + $0x18] sm:$0xff]  ;;  %v744_v13 = vld [vmem:[#allocation7 + $0x10] sm:$0xff]  ;;  %v743_v14 = vld [vmem:[#allocation7 + $0x8] sm:$0xff]  ;;  %s956_s30 = sshra.s32 %s540_s15, 4  ;;  %s962_s1 = scalar_lea.hbm %s1243_s5, 128  ;;  %s957_s30 = int_to_ptr.hbm [resolvable:$true] %s956_s30 }
  0x32   : > { %381 = vmatpush.bf16.msra.mxu0 %v740_v1  ;;  %752 = vmatpush.bf16.msra.mxu3 %v740_v1  ;;  %v745_v12 = vld [vmem:[#allocation7 + $0x18] sm:$0xff]  ;;  %v742_v15 = vld [vmem:[#allocation7] sm:$0xff]  ;;  %s958_s8 = scalar_lea.hbm %s957_s30, 64  ;;  %p963_p11 = scmp.lt.s32.totalorder %s957_s30, %s1243_s5 }
  0x33   : > { %486 = vmatpush.bf16.msra.mxu1 %v748_v7  ;;  %756 = vmatpush.bf16.msra.mxu2 %v748_v7  ;;  %v850_v17 = vld [vmem:[%s1240_s2] ss:$0 sm:$0xff]  ;;  %p959_p1 = scmp.ne.s32.totalorder %s957_s30, %s958_s8  ;;  %p964_p12 = scmp.lt.s32.totalorder %s962_s1, %s958_s8 }
  0x34   : > { %v851_v45 = vld [vmem:[%s1242_s4] ss:$0 sm:$0xff] }
  0x35   : > { %p960_p3 = pnand %p959_p1, %p1148_p2  ;;  %p965_p13 = por %p964_p12, %p963_p11 }
  0x36   : > { %382 = vmatpush.bf16.msra.mxu0 %v739_v2  ;;  %753 = vmatpush.bf16.msra.mxu3 %v739_v2 }
  0x37   : > { %487 = vmatpush.bf16.msra.mxu1 %v747_v8  ;;  %757 = vmatpush.bf16.msra.mxu2 %v747_v8  ;;  %p961_p7 = pneg %p960_p3 }
  0x39   : > { %p966_p0 = pnand %p965_p13, %p961_p7 }
  0x3a   : > { %383 = vmatpush.bf16.msra.mxu0 %v738_v3  ;;  %754 = vmatpush.bf16.msra.mxu3 %v738_v3 }
  0x3b   : > { %488 = vmatpush.bf16.msra.mxu1 %v746_v9  ;;  %758 = vmatpush.bf16.msra.mxu2 %v746_v9 }
  0x3d   : > { %692 = vmatmul.msk.bf16.vlgmr.msra.gmra.mxu0 %vm363_vm0, %v734_v4  ;;  %693 = vmatmul.msk.bf16.vlgmr.msra.gmra.mxu3 %vm363_vm0, %v735_v5 }
  0x3f   : > { %489 = vmatpush.bf16.msra.mxu1 %v745_v12  ;;  %759 = vmatpush.bf16.msra.mxu2 %v745_v12 }
  0x43   : > { %490 = vmatpush.bf16.msra.mxu1 %v744_v13  ;;  %760 = vmatpush.bf16.msra.mxu2 %v744_v13 }
  0x47   : > { %491 = vmatpush.bf16.msra.mxu1 %v743_v14  ;;  %761 = vmatpush.bf16.msra.mxu2 %v743_v14 }
  0x4b   : > { %492 = vmatpush.bf16.msra.mxu1 %v742_v15  ;;  %762 = vmatpush.bf16.msra.mxu2 %v742_v15 }
  0x4d   : > { %694 = vmatmul.msk.bf16.gmra.mxu3 %vm363_vm0, %v736_v10 }
  0x5d   : > { %695 = vmatmul.msk.bf16.gmra.mxu3 %vm363_vm0, %v737_v11 }
  0xba   : > { %v385_v16 = vpop.f32.mrf.mxu0 }
  0xbb   : > { %v386_v18 = vadd.f32 %v850_v17, %v385_v16 }
  0xbd   : > { %v405_v21 = vmax.f32 %v386_v18, 0.0 }
  0xc0   : > { %v390_v19 = vpop.f32.mrf.mxu3 }
  0xc1   : > { %v391_v28 = vadd.f32 %v850_v17, %v390_v19 }
  0xc2   : > { %v387_v20 = vpop.f32.mrf.mxu0 }
  0xc3   : > { %v388_v22 = vadd.f32 %v850_v17, %v387_v20  ;;  %v407_v30 = vmax.f32 %v391_v28, 0.0 }
  0xc5   : > { %v406_v23 = vmax.f32 %v388_v22, 0.0 }
  0xc7   : > { %v413_v24 = vpack.c.bf16 %v406_v23, %v405_v21 }
  0xc8   : > { %v392_v25 = vpop.f32.mrf.mxu3 }
  0xc9   : > { %493 = vmatmul.bf16.vlgmr.msra.gmra.mxu1 %v413_v24  ;;  %v393_v26 = vadd.f32 %v850_v17, %v392_v25 }
  0xcb   : > { %v408_v29 = vmax.f32 %v393_v26, 0.0 }
  0xcd   : > { %v414_v32 = vpack.c.bf16 %v408_v29, %v407_v30 }
  0xd0   : > { %v395_v27 = vpop.f32.mrf.mxu3 }
  0xd1   : > { %v396_v31 = vadd.f32 %v850_v17, %v395_v27 }
  0xd3   : > { %v409_v35 = vmax.f32 %v396_v31, 0.0 }
  0xd8   : > { %v397_v33 = vpop.f32.mrf.mxu3 }
  0xd9   : > { %v398_v34 = vadd.f32 %v850_v17, %v397_v33  ;;  %498 = vmatmul.bf16.gmra.mxu1 %v414_v32 }
  0xdb   : > { %v410_v36 = vmax.f32 %v398_v34, 0.0 }
  0xdd   : > { %v415_v37 = vpack.c.bf16 %v410_v36, %v409_v35 }
  0xdf   : > { %503 = vmatmul.bf16.vlgmr.msra.gmra.mxu2 %v415_v37 }
  0xe0   : > { %v400_v38 = vpop.f32.mrf.mxu3 }
  0xe1   : > { %v401_v39 = vadd.f32 %v850_v17, %v400_v38 }
  0xe3   : > { %v411_v42 = vmax.f32 %v401_v39, 0.0 }
  0xe8   : > { %v402_v40 = vpop.f32.mrf.mxu3 }
  0xe9   : > { %v403_v41 = vadd.f32 %v850_v17, %v402_v40 }
  0xeb   : > { %v412_v43 = vmax.f32 %v403_v41, 0.0 }
  0xed   : > { %v416_v44 = vpack.c.bf16 %v412_v43, %v411_v42 }
  0xef   : > { %508 = vmatmul.bf16.gmra.mxu2 %v416_v44 }
 0x146   : > { %v494_v46 = vpop.f32.mrf.mxu1 }
 0x147   : > { %v495_v47 = vadd.f32 %v851_v45, %v494_v46 }
 0x149   : > { %514 = vst [vmem:[%s295_s13] sm:$0xff] %v495_v47 }
 0x14e   : > { %v496_v48 = vpop.f32.mrf.mxu1 }
 0x14f   : > { %v497_v49 = vadd.f32 %v851_v45, %v496_v48 }
 0x151   : > { %515 = vst [vmem:[%s295_s13 + $0x8] sm:$0xff] %v497_v49 }
 0x156   : > { %v499_v50 = vpop.f32.mrf.mxu1 }
 0x157   : > { %v500_v51 = vadd.f32 %v851_v45, %v499_v50 }
 0x159   : > { %516 = vst [vmem:[%s295_s13 + $0x10] sm:$0xff] %v500_v51 }
 0x15e   : > { %v501_v52 = vpop.f32.mrf.mxu1 }
 0x15f   : > { %v502_v53 = vadd.f32 %v851_v45, %v501_v52 }
 0x161   : > { %517 = vst [vmem:[%s295_s13 + $0x18] sm:$0xff] %v502_v53 }
 0x162   : > { %v504_v54 = vpop.f32.mrf.mxu2 }
 0x163   : > { %v505_v55 = vadd.f32 %v851_v45, %v504_v54 }
 0x165   : > { %518 = vst [vmem:[%s295_s13 + $0x20] sm:$0xff] %v505_v55 }
 0x16a   : > { %v506_v56 = vpop.f32.mrf.mxu2 }
 0x16b   : > { %v507_v57 = vadd.f32 %v851_v45, %v506_v56 }
 0x16d   : > { %519 = vst [vmem:[%s295_s13 + $0x28] sm:$0xff] %v507_v57 }
 0x172   : > { %v509_v58 = vpop.f32.mrf.mxu2 }
 0x173   : > { %v510_v59 = vadd.f32 %v851_v45, %v509_v58 }
 0x175   : > { %520 = vst [vmem:[%s295_s13 + $0x30] sm:$0xff] %v510_v59 }
 0x17a   : > { %v511_v60 = vpop.f32.mrf.mxu2 }
 0x17b   : > { %v512_v61 = vadd.f32 %v851_v45, %v511_v60 }
 0x17d   : > { %521 = vst [vmem:[%s295_s13 + $0x38] sm:$0xff] %v512_v61 }
 0x17e   : > { %969 = shalt.err (!%p966_p0)
}
 0x17f   : > { %s1034_s25 = smov 128   ;;  %s1035_s27 = smov 8  }
 0x180   : > { %773 = dma.vmem_to_hbm [thread:$0]  (%p1148_p2), %s538_s12, 1024, %s540_s15, %s523_s16, %s1034_s25, %s1034_s25, %s1035_s27  }
 0x181 PF: > { %s554_s7 = sand.u32 1, %s1008_s18   ;;  %p787_p4 = pnand %p651_p10, %p1113_p5 }
 0x182   : > { %s555_s13 = scalar_lea.sflag [#allocation4], %s554_s7 }
 0x183   : > { %p788_p6 = pneg %p787_p4 }
 0x185   : > { %1003 = dma.done.wait (%p788_p6), %s555_s13, 1024  }
 0x186   : > { %1005 = vsyncadd (%p788_p6), %s555_s13, 4294966272  ;;  %s22_s23 = sadd.s32 1, %s1028_s23   ;;  %s1257_s18 = smov %s1012_s19 }
 0x187   : > { %p19_p8 = scmp.ge.s32.totalorder %s22_s23, 4   ;;  %s1258_s19 = smov %s1016_s20 }
 0x188   : > { %s1259_s20 = smov %s1158_s9  ;;  %s1260_s21 = smov %s1024_s22 }
 0x189   : > { %s1261_s22 = smov %s1263_s17  ;;  %21 = sbr.rel (!%p19_p8) target bundleno = 10 (0xa), region = 93 }
 0x18e   :  { %561 = vsyncpa [#allocation3], 1 }
 0x18f   :  { %563 = vsyncpa [#allocation3 + $0x1], 1 }
 0x190   :  { %564 = vsyncpa [#allocation6], 1 }
 0x191   :  { %565 = vsyncpa [#allocation4], 1 }
 0x192   :  { %567 = vsyncpa [#allocation4 + $0x1], 1 }

</bundles_post_ra>
